<compile_context>
chip_gen: v6e
topology: v6e:2x2x1
jax: 0.10.0
libtpu: 0.0.40
codegen_flags: <defaults>
</compile_context>

<pallas_src>
import functools

import jax
import jax.numpy as jnp
import numpy as np
from jax.experimental import pallas as pl
from jax.experimental.pallas import tpu as pltpu

LANES = 128


def _round8(n):
    return ((n + 7) // 8) * 8


def _pack_layout(pieces):
    """pieces: list of (name, (rows, cols)) -> {name: (row0, rows, cols)}, total_rows."""
    layout = {}
    r = 0
    for name, (rows, cols) in pieces:
        layout[name] = (r, rows, cols)
        r += _round8(rows)
    return layout, _round8(r)


def pack_weight_slab(params, *, H, I, S):
    """Pack all weights/biases into one zero-padded (R, 128) f32 slab (1 DMA).

    wagg / wih / bih are pre-split so every kernel-side load starts at lane 0.
    """
    p = {k: jnp.asarray(v, jnp.float32) for k, v in params.items()}
    pieces = [
        ('w1',     p['w1']),                 # (obs, I)
        ('b1',     p['b1']),                 # (1, I)
        ('wagg_h', p['wagg'][:H, :]),        # (H, H)
        ('wagg_x', p['wagg'][H:, :]),        # (I*S, H)
        ('bagg',   p['bagg']),               # (1, H)
        ('wih_rz', p['wih'][:, :2 * H]),     # (I, 2H)
        ('wih_n',  p['wih'][:, 2 * H:]),     # (I, H)
        ('bih_rz', p['bih'][:, :2 * H]),     # (1, 2H)
        ('bih_n',  p['bih'][:, 2 * H:]),     # (1, H)
        ('whh',    p['whh']),                # (H, 3H)
        ('bhh',    p['bhh']),                # (1, 3H)
        ('w2',     p['w2']),                 # (H, A)
        ('b2',     p['b2']),                 # (1, A)
    ]
    assert all(v.shape[1] <= LANES for _, v in pieces), "weight wider than 128 lanes"
    layout, total_rows = _pack_layout([(k, v.shape) for k, v in pieces])
    slab = jnp.zeros((total_rows, LANES), jnp.float32)
    for name, arr in pieces:
        r0, rows, cols = layout[name]
        slab = slab.at[r0:r0 + rows, :cols].set(arr)
    return slab, layout


def make_kernel(*, ts, Bp, H, I, S, layout):
    """Whole-sequence forward: batched non-recurrent matmuls + unrolled recurrence."""

    def sl(ref, name):
        r0, rows, cols = layout[name]
        return ref[r0:r0 + rows, 0:cols]

    def kernel(x_ref, slab_ref, preh0_ref, q_ref, preh_out_ref):
        # ---- unpack the packed weight slab (static slices: free) ----
        w1 = sl(slab_ref, 'w1')
        b1 = sl(slab_ref, 'b1')
        wagg_h = sl(slab_ref, 'wagg_h')
        wagg_x = sl(slab_ref, 'wagg_x')
        bagg = sl(slab_ref, 'bagg')
        wih_rz = sl(slab_ref, 'wih_rz')
        wih_n = sl(slab_ref, 'wih_n')
        bih_rz = sl(slab_ref, 'bih_rz')
        bih_n = sl(slab_ref, 'bih_n')
        whh = sl(slab_ref, 'whh')
        bhh = sl(slab_ref, 'bhh')
        # w2 / b2 loaded at FULL 128-lane width (zero-padded in the slab) so the
        # q store below is a lane-dense, unmasked (ts*Bp, 128) store.
        r0, rows, _ = layout['w2']
        w2f = slab_ref[r0:r0 + rows, :]
        r0, rows, _ = layout['b2']
        b2f = slab_ref[r0:r0 + rows, :]

        preh0 = preh0_ref[...]                                   # (Bp, H + I*S)

        # ---- hoisted, state-independent matmuls (batched over ts*Bp rows) ----
        x_all = jnp.maximum(
            jnp.dot(x_ref[...], w1, preferred_element_type=jnp.float32) + b1, 0.0)
        # GRU input-side gates, pre-split so r/z and n are lane-0 aligned.
        gi_rz_all = jnp.dot(x_all, wih_rz, preferred_element_type=jnp.float32) + bih_rz
        gi_n_all = jnp.dot(x_all, wih_n, preferred_element_type=jnp.float32) + bih_n

        def x_at(t):
            # x_t ; negative t comes from the initial pre_h shift register.
            if t >= 0:
                return x_all[t * Bp:(t + 1) * Bp, :]
            j = S + t                                            # t in [-S, -1]
            return preh0[:, H + j * I:H + (j + 1) * I]

        # Skip-slot contribution of aggregate_hidden, hoisted out of the
        # recurrence: build the shifted window matrix (ts*Bp, I*S) once and do
        # ONE batched matmul (replaces ts*S matmuls on the serial chain).
        cols = []
        for j in range(S):                   # lane block j holds x_{t-S+j}
            n_pre = min(S - j, ts)           # leading blocks come from preh0 slots
            pieces = [preh0[:, H + (t + j) * I:H + (t + j + 1) * I]
                      for t in range(n_pre)]
            if ts > n_pre:
                pieces.append(x_all[:(ts - n_pre) * Bp, :])
            cols.append(pieces[0] if len(pieces) == 1
                        else jnp.concatenate(pieces, axis=0))
        window_all = jnp.concatenate(cols, axis=1)               # (ts*Bp, I*S)
        agg_x_all = (jnp.dot(window_all, wagg_x,
                             preferred_element_type=jnp.float32) + bagg)

        # ---- recurrence: only 2 serialized matmuls per timestep ----
        h = preh0[:, :H]                                         # (Bp, H)
        hs = []
        for t in range(ts):        # static unroll (ts=4); use fori_loop if ts grows
            agg = agg_x_all[t * Bp:(t + 1) * Bp, :] + jnp.dot(
                h, wagg_h, preferred_element_type=jnp.float32)
            hagg = jnp.maximum(agg, 0.0)

            # GRUCell (PyTorch gate order r, z, n); gi precomputed above.
            gh = jnp.dot(hagg, whh, preferred_element_type=jnp.float32) + bhh
            rz = jax.nn.sigmoid(gi_rz_all[t * Bp:(t + 1) * Bp, :] + gh[:, :2 * H])
            r = rz[:, :H]
            z = rz[:, H:]
            n = jnp.tanh(gi_n_all[t * Bp:(t + 1) * Bp, :] + r * gh[:, 2 * H:])
            h = (1.0 - z) * n + z * hagg
            hs.append(h)

        # fc2 as ONE batched matmul over the stacked hidden states.
        hs_all = jnp.concatenate(hs, axis=0)                     # (ts*Bp, H)
        q_ref[...] = (jnp.dot(hs_all, w2f, preferred_element_type=jnp.float32)
                      + b2f).astype(q_ref.dtype)                 # lane-dense store

        # Final pre_h = [h_last, x_{ts-S}, ..., x_{ts-1}] (single concat, once).
        preh_out_ref[...] = jnp.concatenate(
            [h] + [x_at(ts - S + j) for j in range(S)], axis=1)

    return kernel


def rnn_skip_agent_forward(inputs, pre_h, params, *, H, I, S, A):
    """inputs: (bs, ts, na, obs) f32; pre_h: (bs*na, H + I*S) f32."""
    bs, ts, na, obs = inputs.shape
    B = bs * na
    D = H + I * S
    Bp = _round8(B)                  # pad rows to a multiple of 8 (aligned sublanes)
    assert A <= LANES and 3 * H <= LANES

    # time-major, bs-major row order; pad rows with zeros (sliced off afterwards)
    x_tm = jnp.transpose(inputs, (1, 0, 2, 3)).reshape(ts, B, obs).astype(jnp.float32)
    pre_h = pre_h.reshape(B, D).astype(jnp.float32)
    if Bp != B:
        x_tm = jnp.pad(x_tm, ((0, 0), (0, Bp - B), (0, 0)))
        pre_h = jnp.pad(pre_h, ((0, Bp - B), (0, 0)))
    x2d = x_tm.reshape(ts * Bp, obs)

    slab, layout = pack_weight_slab(params, H=H, I=I, S=S)

    def full_spec(a):
        return pl.BlockSpec(a.shape, lambda i, _nd=a.ndim: (0,) * _nd)

    in_arrays = [x2d, slab, pre_h]
    q_wide, preh_out = pl.pallas_call(
        make_kernel(ts=ts, Bp=Bp, H=H, I=I, S=S, layout=layout),
        grid=(1,),
        in_specs=[full_spec(a) for a in in_arrays],
        out_specs=[pl.BlockSpec((ts * Bp, LANES), lambda i: (0, 0)),
                   pl.BlockSpec((Bp, D), lambda i: (0, 0))],
        out_shape=[jax.ShapeDtypeStruct((ts * Bp, LANES), jnp.float32),
                   jax.ShapeDtypeStruct((Bp, D), jnp.float32)],
        # recurrent-state input is aliased to the pre_h output (no extra HBM copy)
        input_output_aliases={2: 1},
        compiler_params=pltpu.CompilerParams(
            dimension_semantics=("arbitrary",),
            vmem_limit_bytes=8 * 1024 * 1024),
    )(*in_arrays)

    q = (q_wide[:, :A].reshape(ts, Bp, A)[:, :B]
         .reshape(ts, bs, na, A).transpose(1, 0, 2, 3))
    return q, preh_out[:B]


def reference_forward(inputs, pre_h, p, *, H, I, S, A):
    """Pure-JAX replica of the PyTorch forward (dropout disabled)."""
    bs, ts, na, obs = inputs.shape
    B = bs * na
    x = jax.nn.relu(jnp.einsum('btno,oi->btni', inputs, p['w1']) + p['b1'][0])
    pre_h = pre_h.reshape(B, H + I * S)
    hs = []
    for t in range(ts):
        h = jax.nn.relu(pre_h @ p['wagg'] + p['bagg'][0])
        curr_x = x[:, t].reshape(B, I)
        gi = curr_x @ p['wih'] + p['bih'][0]
        gh = h @ p['whh'] + p['bhh'][0]
        r = jax.nn.sigmoid(gi[:, :H] + gh[:, :H])
        z = jax.nn.sigmoid(gi[:, H:2 * H] + gh[:, H:2 * H])
        n = jnp.tanh(gi[:, 2 * H:] + r * gh[:, 2 * H:])
        curr_h = (1.0 - z) * n + z * h
        hs.append(curr_h.reshape(bs, na, H))
        pre_h = jnp.concatenate([curr_h, pre_h[:, -(I * (S - 1)):], curr_x], axis=1)
    hs = jnp.stack(hs, axis=1)
    q = hs @ p['w2'] + p['b2'][0]
    return q, pre_h


def init_params(key, *, obs, I, H, S, A):
    ks = jax.random.split(key, 10)
    scale = 0.1
    return {
        'w1':   scale * jax.random.normal(ks[0], (obs, I), jnp.float32),
        'b1':   scale * jax.random.normal(ks[1], (1, I), jnp.float32),
        'wagg': scale * jax.random.normal(ks[2], (H + I * S, H), jnp.float32),
        'bagg': scale * jax.random.normal(ks[3], (1, H), jnp.float32),
        'wih':  scale * jax.random.normal(ks[4], (I, 3 * H), jnp.float32),
        'bih':  scale * jax.random.normal(ks[5], (1, 3 * H), jnp.float32),
        'whh':  scale * jax.random.normal(ks[6], (H, 3 * H), jnp.float32),
        'bhh':  scale * jax.random.normal(ks[7], (1, 3 * H), jnp.float32),
        'w2':   scale * jax.random.normal(ks[8], (H, A), jnp.float32),
        'b2':   scale * jax.random.normal(ks[9], (1, A), jnp.float32),
    }


if __name__ == "__main__":
    # args: rnn_input_dim=16, rnn_hidden_dim=32, skip_size=2, n_actions=5,
    #       aggregate_hidden_layer_num=0, dropout=False
    bs, ts, na, obs = 2, 4, 3, 10
    I, H, S, A = 16, 32, 2, 5

    key = jax.random.PRNGKey(0)
    k_in, k_h, k_p = jax.random.split(key, 3)
    inputs = jax.random.normal(k_in, (bs, ts, na, obs), jnp.float32)
    # init_hidden() would be zeros; use a random pre_h to also exercise the
    # skip shift-register path from the initial state.
    pre_h0 = 0.1 * jax.random.normal(k_h, (bs * na, H + I * S), jnp.float32)
    params = init_params(k_p, obs=obs, I=I, H=H, S=S, A=A)

    fwd = functools.partial(rnn_skip_agent_forward, H=H, I=I, S=S, A=A)
    q, pre_h_out = jax.jit(fwd)(inputs, pre_h0, params)
    q = jax.block_until_ready(q)
    pre_h_out = jax.block_until_ready(pre_h_out)

    q_ref, pre_h_ref = reference_forward(inputs, pre_h0, params, H=H, I=I, S=S, A=A)

    assert q.shape == (bs, ts, na, A)
    assert pre_h_out.shape == (bs * na, H + I * S)
    np.testing.assert_allclose(np.asarray(q), np.asarray(q_ref), rtol=1e-4, atol=1e-4)
    np.testing.assert_allclose(np.asarray(pre_h_out), np.asarray(pre_h_ref),
                               rtol=1e-4, atol=1e-4)
    print("KERNEL_OK")
</pallas_src>

<mosaic_0001>
module attributes {stable_mosaic.version = 11 : i64} {
  func.func @kernel(%arg0: i32, %arg1: memref<32x10xf32, #tpu.memory_space<vmem>>, %arg2: memref<224x128xf32, #tpu.memory_space<vmem>>, %arg3: memref<8x64xf32, #tpu.memory_space<vmem>>, %arg4: memref<32x128xf32, #tpu.memory_space<vmem>>, %arg5: memref<8x64xf32, #tpu.memory_space<vmem>>) attributes {dimension_semantics = [#tpu.dimension_semantics<arbitrary>], iteration_bounds = array<i64: 1>, scalar_prefetch = 0 : i64, scratch_operands = 0 : i64, tpu.core_type = #tpu.core_type<tc>, window_params = [{pipeline_mode = #tpu.pipeline_mode<synchronous>, transform_indices = @transform_0, window_bounds = array<i64: 32, 10>}, {pipeline_mode = #tpu.pipeline_mode<synchronous>, transform_indices = @transform_1, window_bounds = array<i64: 224, 128>}, {pipeline_mode = #tpu.pipeline_mode<synchronous>, transform_indices = @transform_2, window_bounds = array<i64: 8, 64>}, {pipeline_mode = #tpu.pipeline_mode<synchronous>, transform_indices = @transform_3, window_bounds = array<i64: 32, 128>}, {pipeline_mode = #tpu.pipeline_mode<synchronous>, transform_indices = @transform_4, window_bounds = array<i64: 8, 64>}]} {
    %c0 = arith.constant 0 : index
    %c0_0 = arith.constant 0 : index
    %0 = vector.load %arg2[%c0, %c0_0] : memref<224x128xf32, #tpu.memory_space<vmem>>, vector<10x16xf32>
    %c16 = arith.constant 16 : index
    %c0_1 = arith.constant 0 : index
    %1 = vector.load %arg2[%c16, %c0_1] : memref<224x128xf32, #tpu.memory_space<vmem>>, vector<1x16xf32>
    %c24 = arith.constant 24 : index
    %c0_2 = arith.constant 0 : index
    %2 = vector.load %arg2[%c24, %c0_2] : memref<224x128xf32, #tpu.memory_space<vmem>>, vector<32x32xf32>
    %c56 = arith.constant 56 : index
    %c0_3 = arith.constant 0 : index
    %3 = vector.load %arg2[%c56, %c0_3] : memref<224x128xf32, #tpu.memory_space<vmem>>, vector<32x32xf32>
    %c88 = arith.constant 88 : index
    %c0_4 = arith.constant 0 : index
    %4 = vector.load %arg2[%c88, %c0_4] : memref<224x128xf32, #tpu.memory_space<vmem>>, vector<1x32xf32>
    %c96 = arith.constant 96 : index
    %c0_5 = arith.constant 0 : index
    %5 = vector.load %arg2[%c96, %c0_5] : memref<224x128xf32, #tpu.memory_space<vmem>>, vector<16x64xf32>
    %c112 = arith.constant 112 : index
    %c0_6 = arith.constant 0 : index
    %6 = vector.load %arg2[%c112, %c0_6] : memref<224x128xf32, #tpu.memory_space<vmem>>, vector<16x32xf32>
    %c128 = arith.constant 128 : index
    %c0_7 = arith.constant 0 : index
    %7 = vector.load %arg2[%c128, %c0_7] : memref<224x128xf32, #tpu.memory_space<vmem>>, vector<1x64xf32>
    %c136 = arith.constant 136 : index
    %c0_8 = arith.constant 0 : index
    %8 = vector.load %arg2[%c136, %c0_8] : memref<224x128xf32, #tpu.memory_space<vmem>>, vector<1x32xf32>
    %c144 = arith.constant 144 : index
    %c0_9 = arith.constant 0 : index
    %9 = vector.load %arg2[%c144, %c0_9] : memref<224x128xf32, #tpu.memory_space<vmem>>, vector<32x96xf32>
    %c176 = arith.constant 176 : index
    %c0_10 = arith.constant 0 : index
    %10 = vector.load %arg2[%c176, %c0_10] : memref<224x128xf32, #tpu.memory_space<vmem>>, vector<1x96xf32>
    %c184 = arith.constant 184 : index
    %c0_11 = arith.constant 0 : index
    %11 = vector.load %arg2[%c184, %c0_11] : memref<224x128xf32, #tpu.memory_space<vmem>>, vector<32x128xf32>
    %c216 = arith.constant 216 : index
    %c0_12 = arith.constant 0 : index
    %12 = vector.load %arg2[%c216, %c0_12] : memref<224x128xf32, #tpu.memory_space<vmem>>, vector<1x128xf32>
    %c0_13 = arith.constant 0 : index
    %c0_14 = arith.constant 0 : index
    %13 = vector.load %arg3[%c0_13, %c0_14] : memref<8x64xf32, #tpu.memory_space<vmem>>, vector<8x64xf32>
    %c0_15 = arith.constant 0 : index
    %c0_16 = arith.constant 0 : index
    %14 = vector.load %arg1[%c0_15, %c0_16] : memref<32x10xf32, #tpu.memory_space<vmem>>, vector<32x10xf32>
    %cst = arith.constant dense<0.000000e+00> : vector<32x16xf32>
    %15 = tpu.matmul %14, %0, %cst {dimension_numbers = #tpu.dot_dimension_numbers<[1], [0], [0], [1], [0, 0, 1, 1], [], []>} : vector<32x10xf32>, vector<10x16xf32>, vector<32x16xf32> -> vector<32x16xf32>
    %16 = vector.broadcast %1 : vector<1x16xf32> to vector<32x16xf32>
    %17 = arith.addf %15, %16 : vector<32x16xf32>
    %cst_17 = arith.constant 0.000000e+00 : f32
    %18 = vector.broadcast %cst_17 : f32 to vector<32x16xf32>
    %19 = arith.maximumf %17, %18 : vector<32x16xf32>
    %cst_18 = arith.constant dense<0.000000e+00> : vector<32x64xf32>
    %20 = tpu.matmul %19, %5, %cst_18 {dimension_numbers = #tpu.dot_dimension_numbers<[1], [0], [0], [1], [0, 0, 1, 1], [], []>} : vector<32x16xf32>, vector<16x64xf32>, vector<32x64xf32> -> vector<32x64xf32>
    %21 = vector.broadcast %7 : vector<1x64xf32> to vector<32x64xf32>
    %22 = arith.addf %20, %21 : vector<32x64xf32>
    %cst_19 = arith.constant dense<0.000000e+00> : vector<32x32xf32>
    %23 = tpu.matmul %19, %6, %cst_19 {dimension_numbers = #tpu.dot_dimension_numbers<[1], [0], [0], [1], [0, 0, 1, 1], [], []>} : vector<32x16xf32>, vector<16x32xf32>, vector<32x32xf32> -> vector<32x32xf32>
    %24 = vector.broadcast %8 : vector<1x32xf32> to vector<32x32xf32>
    %25 = arith.addf %23, %24 : vector<32x32xf32>
    %26 = vector.extract_strided_slice %13 {offsets = [0, 32], sizes = [8, 16], strides = [1, 1]} : vector<8x64xf32> to vector<8x16xf32>
    %27 = vector.extract_strided_slice %13 {offsets = [0, 48], sizes = [8, 16], strides = [1, 1]} : vector<8x64xf32> to vector<8x16xf32>
    %28 = vector.extract_strided_slice %19 {offsets = [0, 0], sizes = [16, 16], strides = [1, 1]} : vector<32x16xf32> to vector<16x16xf32>
    %29 = tpu.concatenate %26, %27, %28 in 0 : vector<8x16xf32>, vector<8x16xf32>, vector<16x16xf32> -> vector<32x16xf32>
    %30 = vector.extract_strided_slice %13 {offsets = [0, 48], sizes = [8, 16], strides = [1, 1]} : vector<8x64xf32> to vector<8x16xf32>
    %31 = vector.extract_strided_slice %19 {offsets = [0, 0], sizes = [24, 16], strides = [1, 1]} : vector<32x16xf32> to vector<24x16xf32>
    %32 = tpu.concatenate %30, %31 in 0 : vector<8x16xf32>, vector<24x16xf32> -> vector<32x16xf32>
    %33 = tpu.concatenate %29, %32 in 1 : vector<32x16xf32>, vector<32x16xf32> -> vector<32x32xf32>
    %cst_20 = arith.constant dense<0.000000e+00> : vector<32x32xf32>
    %34 = tpu.matmul %33, %3, %cst_20 {dimension_numbers = #tpu.dot_dimension_numbers<[1], [0], [0], [1], [0, 0, 1, 1], [], []>} : vector<32x32xf32>, vector<32x32xf32>, vector<32x32xf32> -> vector<32x32xf32>
    %35 = vector.broadcast %4 : vector<1x32xf32> to vector<32x32xf32>
    %36 = arith.addf %34, %35 : vector<32x32xf32>
    %37 = vector.extract_strided_slice %13 {offsets = [0, 0], sizes = [8, 32], strides = [1, 1]} : vector<8x64xf32> to vector<8x32xf32>
    %38 = vector.extract_strided_slice %36 {offsets = [0, 0], sizes = [8, 32], strides = [1, 1]} : vector<32x32xf32> to vector<8x32xf32>
    %cst_21 = arith.constant dense<0.000000e+00> : vector<8x32xf32>
    %39 = tpu.matmul %37, %2, %cst_21 {dimension_numbers = #tpu.dot_dimension_numbers<[1], [0], [0], [1], [0, 0, 1, 1], [], []>} : vector<8x32xf32>, vector<32x32xf32>, vector<8x32xf32> -> vector<8x32xf32>
    %40 = arith.addf %38, %39 : vector<8x32xf32>
    %cst_22 = arith.constant 0.000000e+00 : f32
    %41 = vector.broadcast %cst_22 : f32 to vector<8x32xf32>
    %42 = arith.maximumf %40, %41 : vector<8x32xf32>
    %cst_23 = arith.constant dense<0.000000e+00> : vector<8x96xf32>
    %43 = tpu.matmul %42, %9, %cst_23 {dimension_numbers = #tpu.dot_dimension_numbers<[1], [0], [0], [1], [0, 0, 1, 1], [], []>} : vector<8x32xf32>, vector<32x96xf32>, vector<8x96xf32> -> vector<8x96xf32>
    %44 = vector.broadcast %10 : vector<1x96xf32> to vector<8x96xf32>
    %45 = arith.addf %43, %44 : vector<8x96xf32>
    %46 = vector.extract_strided_slice %22 {offsets = [0, 0], sizes = [8, 64], strides = [1, 1]} : vector<32x64xf32> to vector<8x64xf32>
    %47 = vector.extract_strided_slice %45 {offsets = [0, 0], sizes = [8, 64], strides = [1, 1]} : vector<8x96xf32> to vector<8x64xf32>
    %48 = arith.addf %46, %47 : vector<8x64xf32>
    %49 = arith.negf %48 : vector<8x64xf32>
    %50 = math.exp %49 : vector<8x64xf32>
    %cst_24 = arith.constant 1.000000e+00 : f32
    %51 = vector.broadcast %cst_24 : f32 to vector<8x64xf32>
    %52 = arith.addf %51, %50 : vector<8x64xf32>
    %53 = arith.divf %51, %52 : vector<8x64xf32>
    %54 = vector.extract_strided_slice %53 {offsets = [0, 0], sizes = [8, 32], strides = [1, 1]} : vector<8x64xf32> to vector<8x32xf32>
    %55 = vector.extract_strided_slice %53 {offsets = [0, 32], sizes = [8, 32], strides = [1, 1]} : vector<8x64xf32> to vector<8x32xf32>
    %56 = vector.extract_strided_slice %25 {offsets = [0, 0], sizes = [8, 32], strides = [1, 1]} : vector<32x32xf32> to vector<8x32xf32>
    %57 = vector.extract_strided_slice %45 {offsets = [0, 64], sizes = [8, 32], strides = [1, 1]} : vector<8x96xf32> to vector<8x32xf32>
    %58 = arith.mulf %54, %57 : vector<8x32xf32>
    %59 = arith.addf %56, %58 : vector<8x32xf32>
    %60 = math.tanh %59 : vector<8x32xf32>
    %cst_25 = arith.constant 1.000000e+00 : f32
    %61 = vector.broadcast %cst_25 : f32 to vector<8x32xf32>
    %62 = arith.subf %61, %55 : vector<8x32xf32>
    %63 = arith.mulf %62, %60 : vector<8x32xf32>
    %64 = arith.mulf %55, %42 : vector<8x32xf32>
    %65 = arith.addf %63, %64 : vector<8x32xf32>
    %66 = vector.extract_strided_slice %36 {offsets = [8, 0], sizes = [8, 32], strides = [1, 1]} : vector<32x32xf32> to vector<8x32xf32>
    %cst_26 = arith.constant dense<0.000000e+00> : vector<8x32xf32>
    %67 = tpu.matmul %65, %2, %cst_26 {dimension_numbers = #tpu.dot_dimension_numbers<[1], [0], [0], [1], [0, 0, 1, 1], [], []>} : vector<8x32xf32>, vector<32x32xf32>, vector<8x32xf32> -> vector<8x32xf32>
    %68 = arith.addf %66, %67 : vector<8x32xf32>
    %cst_27 = arith.constant 0.000000e+00 : f32
    %69 = vector.broadcast %cst_27 : f32 to vector<8x32xf32>
    %70 = arith.maximumf %68, %69 : vector<8x32xf32>
    %cst_28 = arith.constant dense<0.000000e+00> : vector<8x96xf32>
    %71 = tpu.matmul %70, %9, %cst_28 {dimension_numbers = #tpu.dot_dimension_numbers<[1], [0], [0], [1], [0, 0, 1, 1], [], []>} : vector<8x32xf32>, vector<32x96xf32>, vector<8x96xf32> -> vector<8x96xf32>
    %72 = vector.broadcast %10 : vector<1x96xf32> to vector<8x96xf32>
    %73 = arith.addf %71, %72 : vector<8x96xf32>
    %74 = vector.extract_strided_slice %22 {offsets = [8, 0], sizes = [8, 64], strides = [1, 1]} : vector<32x64xf32> to vector<8x64xf32>
    %75 = vector.extract_strided_slice %73 {offsets = [0, 0], sizes = [8, 64], strides = [1, 1]} : vector<8x96xf32> to vector<8x64xf32>
    %76 = arith.addf %74, %75 : vector<8x64xf32>
    %77 = arith.negf %76 : vector<8x64xf32>
    %78 = math.exp %77 : vector<8x64xf32>
    %cst_29 = arith.constant 1.000000e+00 : f32
    %79 = vector.broadcast %cst_29 : f32 to vector<8x64xf32>
    %80 = arith.addf %79, %78 : vector<8x64xf32>
    %81 = arith.divf %79, %80 : vector<8x64xf32>
    %82 = vector.extract_strided_slice %81 {offsets = [0, 0], sizes = [8, 32], strides = [1, 1]} : vector<8x64xf32> to vector<8x32xf32>
    %83 = vector.extract_strided_slice %81 {offsets = [0, 32], sizes = [8, 32], strides = [1, 1]} : vector<8x64xf32> to vector<8x32xf32>
    %84 = vector.extract_strided_slice %25 {offsets = [8, 0], sizes = [8, 32], strides = [1, 1]} : vector<32x32xf32> to vector<8x32xf32>
    %85 = vector.extract_strided_slice %73 {offsets = [0, 64], sizes = [8, 32], strides = [1, 1]} : vector<8x96xf32> to vector<8x32xf32>
    %86 = arith.mulf %82, %85 : vector<8x32xf32>
    %87 = arith.addf %84, %86 : vector<8x32xf32>
    %88 = math.tanh %87 : vector<8x32xf32>
    %cst_30 = arith.constant 1.000000e+00 : f32
    %89 = vector.broadcast %cst_30 : f32 to vector<8x32xf32>
    %90 = arith.subf %89, %83 : vector<8x32xf32>
    %91 = arith.mulf %90, %88 : vector<8x32xf32>
    %92 = arith.mulf %83, %70 : vector<8x32xf32>
    %93 = arith.addf %91, %92 : vector<8x32xf32>
    %94 = vector.extract_strided_slice %36 {offsets = [16, 0], sizes = [8, 32], strides = [1, 1]} : vector<32x32xf32> to vector<8x32xf32>
    %cst_31 = arith.constant dense<0.000000e+00> : vector<8x32xf32>
    %95 = tpu.matmul %93, %2, %cst_31 {dimension_numbers = #tpu.dot_dimension_numbers<[1], [0], [0], [1], [0, 0, 1, 1], [], []>} : vector<8x32xf32>, vector<32x32xf32>, vector<8x32xf32> -> vector<8x32xf32>
    %96 = arith.addf %94, %95 : vector<8x32xf32>
    %cst_32 = arith.constant 0.000000e+00 : f32
    %97 = vector.broadcast %cst_32 : f32 to vector<8x32xf32>
    %98 = arith.maximumf %96, %97 : vector<8x32xf32>
    %cst_33 = arith.constant dense<0.000000e+00> : vector<8x96xf32>
    %99 = tpu.matmul %98, %9, %cst_33 {dimension_numbers = #tpu.dot_dimension_numbers<[1], [0], [0], [1], [0, 0, 1, 1], [], []>} : vector<8x32xf32>, vector<32x96xf32>, vector<8x96xf32> -> vector<8x96xf32>
    %100 = vector.broadcast %10 : vector<1x96xf32> to vector<8x96xf32>
    %101 = arith.addf %99, %100 : vector<8x96xf32>
    %102 = vector.extract_strided_slice %22 {offsets = [16, 0], sizes = [8, 64], strides = [1, 1]} : vector<32x64xf32> to vector<8x64xf32>
    %103 = vector.extract_strided_slice %101 {offsets = [0, 0], sizes = [8, 64], strides = [1, 1]} : vector<8x96xf32> to vector<8x64xf32>
    %104 = arith.addf %102, %103 : vector<8x64xf32>
    %105 = arith.negf %104 : vector<8x64xf32>
    %106 = math.exp %105 : vector<8x64xf32>
    %cst_34 = arith.constant 1.000000e+00 : f32
    %107 = vector.broadcast %cst_34 : f32 to vector<8x64xf32>
    %108 = arith.addf %107, %106 : vector<8x64xf32>
    %109 = arith.divf %107, %108 : vector<8x64xf32>
    %110 = vector.extract_strided_slice %109 {offsets = [0, 0], sizes = [8, 32], strides = [1, 1]} : vector<8x64xf32> to vector<8x32xf32>
    %111 = vector.extract_strided_slice %109 {offsets = [0, 32], sizes = [8, 32], strides = [1, 1]} : vector<8x64xf32> to vector<8x32xf32>
    %112 = vector.extract_strided_slice %25 {offsets = [16, 0], sizes = [8, 32], strides = [1, 1]} : vector<32x32xf32> to vector<8x32xf32>
    %113 = vector.extract_strided_slice %101 {offsets = [0, 64], sizes = [8, 32], strides = [1, 1]} : vector<8x96xf32> to vector<8x32xf32>
    %114 = arith.mulf %110, %113 : vector<8x32xf32>
    %115 = arith.addf %112, %114 : vector<8x32xf32>
    %116 = math.tanh %115 : vector<8x32xf32>
    %cst_35 = arith.constant 1.000000e+00 : f32
    %117 = vector.broadcast %cst_35 : f32 to vector<8x32xf32>
    %118 = arith.subf %117, %111 : vector<8x32xf32>
    %119 = arith.mulf %118, %116 : vector<8x32xf32>
    %120 = arith.mulf %111, %98 : vector<8x32xf32>
    %121 = arith.addf %119, %120 : vector<8x32xf32>
    %122 = vector.extract_strided_slice %36 {offsets = [24, 0], sizes = [8, 32], strides = [1, 1]} : vector<32x32xf32> to vector<8x32xf32>
    %cst_36 = arith.constant dense<0.000000e+00> : vector<8x32xf32>
    %123 = tpu.matmul %121, %2, %cst_36 {dimension_numbers = #tpu.dot_dimension_numbers<[1], [0], [0], [1], [0, 0, 1, 1], [], []>} : vector<8x32xf32>, vector<32x32xf32>, vector<8x32xf32> -> vector<8x32xf32>
    %124 = arith.addf %122, %123 : vector<8x32xf32>
    %cst_37 = arith.constant 0.000000e+00 : f32
    %125 = vector.broadcast %cst_37 : f32 to vector<8x32xf32>
    %126 = arith.maximumf %124, %125 : vector<8x32xf32>
    %cst_38 = arith.constant dense<0.000000e+00> : vector<8x96xf32>
    %127 = tpu.matmul %126, %9, %cst_38 {dimension_numbers = #tpu.dot_dimension_numbers<[1], [0], [0], [1], [0, 0, 1, 1], [], []>} : vector<8x32xf32>, vector<32x96xf32>, vector<8x96xf32> -> vector<8x96xf32>
    %128 = vector.broadcast %10 : vector<1x96xf32> to vector<8x96xf32>
    %129 = arith.addf %127, %128 : vector<8x96xf32>
    %130 = vector.extract_strided_slice %22 {offsets = [24, 0], sizes = [8, 64], strides = [1, 1]} : vector<32x64xf32> to vector<8x64xf32>
    %131 = vector.extract_strided_slice %129 {offsets = [0, 0], sizes = [8, 64], strides = [1, 1]} : vector<8x96xf32> to vector<8x64xf32>
    %132 = arith.addf %130, %131 : vector<8x64xf32>
    %133 = arith.negf %132 : vector<8x64xf32>
    %134 = math.exp %133 : vector<8x64xf32>
    %cst_39 = arith.constant 1.000000e+00 : f32
    %135 = vector.broadcast %cst_39 : f32 to vector<8x64xf32>
    %136 = arith.addf %135, %134 : vector<8x64xf32>
    %137 = arith.divf %135, %136 : vector<8x64xf32>
    %138 = vector.extract_strided_slice %137 {offsets = [0, 0], sizes = [8, 32], strides = [1, 1]} : vector<8x64xf32> to vector<8x32xf32>
    %139 = vector.extract_strided_slice %137 {offsets = [0, 32], sizes = [8, 32], strides = [1, 1]} : vector<8x64xf32> to vector<8x32xf32>
    %140 = vector.extract_strided_slice %25 {offsets = [24, 0], sizes = [8, 32], strides = [1, 1]} : vector<32x32xf32> to vector<8x32xf32>
    %141 = vector.extract_strided_slice %129 {offsets = [0, 64], sizes = [8, 32], strides = [1, 1]} : vector<8x96xf32> to vector<8x32xf32>
    %142 = arith.mulf %138, %141 : vector<8x32xf32>
    %143 = arith.addf %140, %142 : vector<8x32xf32>
    %144 = math.tanh %143 : vector<8x32xf32>
    %cst_40 = arith.constant 1.000000e+00 : f32
    %145 = vector.broadcast %cst_40 : f32 to vector<8x32xf32>
    %146 = arith.subf %145, %139 : vector<8x32xf32>
    %147 = arith.mulf %146, %144 : vector<8x32xf32>
    %148 = arith.mulf %139, %126 : vector<8x32xf32>
    %149 = arith.addf %147, %148 : vector<8x32xf32>
    %150 = tpu.concatenate %65, %93, %121, %149 in 0 : vector<8x32xf32>, vector<8x32xf32>, vector<8x32xf32>, vector<8x32xf32> -> vector<32x32xf32>
    %cst_41 = arith.constant dense<0.000000e+00> : vector<32x128xf32>
    %151 = tpu.matmul %150, %11, %cst_41 {dimension_numbers = #tpu.dot_dimension_numbers<[1], [0], [0], [1], [0, 0, 1, 1], [], []>} : vector<32x32xf32>, vector<32x128xf32>, vector<32x128xf32> -> vector<32x128xf32>
    %152 = vector.broadcast %12 : vector<1x128xf32> to vector<32x128xf32>
    %153 = arith.addf %151, %152 : vector<32x128xf32>
    %c0_42 = arith.constant 0 : index
    %c0_43 = arith.constant 0 : index
    %154 = vector.load %arg4[%c0_42, %c0_43] : memref<32x128xf32, #tpu.memory_space<vmem>>, vector<32x128xf32>
    tpu.vector_store %arg4[%c0_42, %c0_43], %153 {strides = array<i32>} : memref<32x128xf32, #tpu.memory_space<vmem>>, vector<32x128xf32>,
    %155 = vector.extract_strided_slice %19 {offsets = [16, 0], sizes = [8, 16], strides = [1, 1]} : vector<32x16xf32> to vector<8x16xf32>
    %156 = vector.extract_strided_slice %19 {offsets = [24, 0], sizes = [8, 16], strides = [1, 1]} : vector<32x16xf32> to vector<8x16xf32>
    %157 = tpu.concatenate %149, %155, %156 in 1 : vector<8x32xf32>, vector<8x16xf32>, vector<8x16xf32> -> vector<8x64xf32>
    %c0_44 = arith.constant 0 : index
    %c0_45 = arith.constant 0 : index
    %158 = vector.load %arg5[%c0_44, %c0_45] : memref<8x64xf32, #tpu.memory_space<vmem>>, vector<8x64xf32>
    tpu.vector_store %arg5[%c0_44, %c0_45], %157 {strides = array<i32>} : memref<8x64xf32, #tpu.memory_space<vmem>>, vector<8x64xf32>,
    return
  }
  func.func @transform_0(%arg0: i32) -> (i32, i32) {
    %c0_i32 = arith.constant 0 : i32
    %c0_i32_0 = arith.constant 0 : i32
    %c0_i32_1 = arith.constant 0 : i32
    return %c0_i32, %c0_i32_0 : i32, i32
  }
  func.func @transform_1(%arg0: i32) -> (i32, i32) {
    %c0_i32 = arith.constant 0 : i32
    %c0_i32_0 = arith.constant 0 : i32
    %c0_i32_1 = arith.constant 0 : i32
    return %c0_i32, %c0_i32_0 : i32, i32
  }
  func.func @transform_2(%arg0: i32) -> (i32, i32) {
    %c0_i32 = arith.constant 0 : i32
    %c0_i32_0 = arith.constant 0 : i32
    %c0_i32_1 = arith.constant 0 : i32
    return %c0_i32, %c0_i32_0 : i32, i32
  }
  func.func @transform_3(%arg0: i32) -> (i32, i32) {
    %c0_i32 = arith.constant 0 : i32
    %c0_i32_0 = arith.constant 0 : i32
    %c0_i32_1 = arith.constant 0 : i32
    return %c0_i32, %c0_i32_0 : i32, i32
  }
  func.func @transform_4(%arg0: i32) -> (i32, i32) {
    %c0_i32 = arith.constant 0 : i32
    %c0_i32_0 = arith.constant 0 : i32
    %c0_i32_1 = arith.constant 0 : i32
    return %c0_i32, %c0_i32_0 : i32, i32
  }
}

</mosaic_0001>

<bundles_post_ra>
// kernel: rnn_skip_agent_forward.1
= control target key start
LH: loop header
LB: loop body
LE: loop exit
PB: predicated region body
PF: predicated region fallthrough
CT: control target
= control target key end

     0   :  { %vm66_vm0 = vcmask 1041408   ;;  %vm53_vm1 = vcmask 80896   ;;  %s1598_s25 = smov 112   ;;  %s1599_s28 = smov 96   ;;  %vm163_vm2 = vcmask 130048   ;;  %vm391_vm3 = vcmask 261120   ;;  %s1983_s1 = inlined_call_operand.vmem [shape: f32[224,128], index: 1, kind: input, shape index: {}]   ;;  %s1984_s0 = inlined_call_operand.vmem [shape: f32[32,10], index: 0, kind: input, shape index: {}]   ;;  %s1985_s2 = inlined_call_operand.vmem [shape: f32[8,64], index: 2, kind: input, shape index: {}, may-alias: {2,4}]   ;;  %s1986_s3 = inlined_call_operand.vmem [shape: f32[32,128], index: 3, kind: output, shape index: {0}]   ;;  %s1987_s4 = inlined_call_operand.vmem [shape: f32[8,64], index: 4, kind: output, shape index: {1}, may-alias: {2,4}]  }
   0x1   :  { %v17_v0 = vld [vmem:[%s1983_s1 + $0x8] sm:$0x3]  ;;  %v16_v1 = vld [vmem:[%s1983_s1] sm:$0xff]  ;;  %v47_v5 = vld [vmem:[%s1984_s0 + $0x10] sm:$0xff]  ;;  %s1600_s13 = smov 32   ;;  %s1601_s14 = smov 48  }
   0x2   :  { %v45_v2 = vld [vmem:[%s1984_s0] sm:$0xff]  ;;  %1421 = vmatprep.subr.msk.mxu1 %vm66_vm0, %v17_v0  ;;  %v46_v4 = vld [vmem:[%s1984_s0 + $0x8] sm:$0xff]  ;;  %v48_v6 = vld [vmem:[%s1984_s0 + $0x18] sm:$0xff]  ;;  %v1602_v28 = vmov 0.0   ;;  %vm1603_vm4 = vmmov 0   ;;  %s1604_s22 = smov 64  }
   0x3   :  { %1425 = vmatprep.mubr.msk.f32.mxu1 %vm53_vm1, %v45_v2  ;;  %v1643_v3 = vld [vmem:[%s1985_s2] sm:$0xff]  ;;  %1422 = vmatpush3.msk.msra.mxu1 %vm66_vm0, %v17_v0  ;;  %v29_v7 = vld [vmem:[%s1983_s1 + $0x68] sm:$0xff]  ;;  %v31_v8 = vld [vmem:[%s1983_s1 + $0x78] sm:$0xff]  ;;  %vm1296_vm5 = vcmask 392192   ;;  %vm1298_vm6 = vcmask 523264  }
   0x4   :  { %351 = vrot.lane.b32.xlu0 %v1643_v3, %s1598_s25  ;;  %1423 = vmatprep.subr.mxu1 %v16_v1  ;;  %v28_v9 = vld [vmem:[%s1983_s1 + $0x60] sm:$0xff]  ;;  %v30_v10 = vld [vmem:[%s1983_s1 + $0x70] sm:$0xff]  ;;  %v25_v26 = vld [vmem:[%s1983_s1 + $0x48] sm:$0xff] }
   0x5   :  { %363 = vrot.lane.b32.xlu1 %v1643_v3, %s1599_s28  ;;  %1424 = vmatpush3.msra.mxu1 %v16_v1  ;;  %v1308_v13 = vld [vmem:[%s1983_s1 + $0x10] ss:$0 sm:$0xff]  ;;  %v24_v30 = vld [vmem:[%s1983_s1 + $0x40] sm:$0xff]  ;;  %v1719_v31 = vld [vmem:[%s1983_s1 + $0x28] sm:$0xff] }
   0x6   :  { %1426 = vmatmul.mubr.msk.f32.vlgmr.msra.gmra.mxu1 %vm53_vm1, %v46_v4  ;;  %1431 = vmatprep.subr.mxu1 %v29_v7  ;;  %v26_v25 = vld [vmem:[%s1983_s1 + $0x50] sm:$0xff]  ;;  %v23_v32 = vld [vmem:[%s1983_s1 + $0x38] sm:$0xff]  ;;  %v1732_v33 = vld [vmem:[%s1983_s1 + $0x20] sm:$0xff] }
   0x7   :  { %1428 = vmatprep.mubr.msk.f32.mxu1 %vm53_vm1, %v47_v5  ;;  %1441 = vmatprep.subr.mxu0 %v31_v8  ;;  %v1710_v29 = vld [vmem:[%s1983_s1 + $0x30] sm:$0xff]  ;;  %v1738_v34 = vld [vmem:[%s1983_s1 + $0x18] sm:$0xff]  ;;  %v1767_v39 = vld [vmem:[%s1983_s1 + $0x80] ss:$0 sm:$0xff] }
   0x8   :  { %1432 = vmatpush3.msra.mxu1 %v29_v7  ;;  %1442 = vmatpush3.msra.mxu0 %v31_v8  ;;  %v1772_v40 = vld [vmem:[%s1983_s1 + $0x88] ss:$0 sm:$0xff]  ;;  %v1804_v58 = vld [vmem:[%s1983_s1 + $0xa0] sm:$0xff]  ;;  %v1811_v60 = vld [vmem:[%s1983_s1 + $0x98] sm:$0xff] }
   0x9   :  { %1433 = vmatprep.subr.mxu1 %v28_v9  ;;  %1443 = vmatprep.subr.mxu0 %v30_v10  ;;  %v1797_v56 = vld [vmem:[%s1983_s1 + $0xa8] sm:$0xff]  ;;  %v1817_v61 = vld [vmem:[%s1983_s1 + $0x90] sm:$0xff] }
   0xa   :  { %1429 = vmatmul.mubr.msk.f32.gmra.mxu1 %vm53_vm1, %v48_v6  ;;  %1444 = vmatpush3.msra.mxu0 %v30_v10  ;;  %v1833_v6 = vld [vmem:[%s1983_s1 + $0x58] ss:$0 sm:$0xff] }
   0xb   :  { %1434 = vmatpush3.msra.mxu1 %v28_v9  ;;  %1465 = vmatprep.subr.mxu0 %v1602_v28 }
   0xc   :  { %1451 = vmatprep.subr.mxu1 %v26_v25 }
  0x76   :  { %v352_v11 = vpop.permute.xlu0 %351 }
  0x77   :  { %365 = vrot.lane.b32.xlu1 %v352_v11, %s1599_s28  ;;  %v364_v27 = vpop.permute.xlu1 %363 }
  0xc6   :  { %v1427_v12 = vpop.f32.mrf.mxu1 }
  0xc7   :  { %v142_v15 = vadd.f32 %v1427_v12, %v1308_v13 }
  0xc8   :  { %v136_v14 = vpop.f32.mrf.mxu1 }
  0xc9   :  { %v137_v16 = vadd.f32 %v1308_v13, %v136_v14  ;;  %v1676_v21 = vmax.f32 %v142_v15, 0.0 }
  0xca   :  { %v1430_v17 = vpop.f32.mrf.mxu1 }
  0xcb   :  { %v155_v18 = vmax.f32 %v137_v16, 0.0  ;;  %v152_v19 = vadd.f32 %v1430_v17, %v1308_v13 }
  0xcc   :  { %v146_v20 = vpop.f32.mrf.mxu1 }
  0xcd   :  { %353 = vrot.lane.b32.xlu1 %v155_v18, %s1600_s13  ;;  %357 = vrot.lane.b32.xlu0 %v155_v18, %s1601_s14  ;;  %v147_v22 = vadd.f32 %v1308_v13, %v146_v20  ;;  %v1686_v23 = vmax.f32 %v152_v19, 0.0  ;;  %v1854_v13 = vld [vmem:[%s1983_s1 + $0xb0] ss:$0 sm:$0xff] }
  0xce   :  { %1435 = vmatprep.mubr.msk.f32.mxu1 %vm163_vm2, %v155_v18  ;;  %1445 = vmatprep.mubr.msk.f32.mxu0 %vm163_vm2, %v155_v18 }
  0xcf   :  { %1436 = vmatmul.mubr.msk.f32.vlgmr.msra.gmra.mxu1 %vm163_vm2, %v1676_v21  ;;  %1446 = vmatmul.mubr.msk.f32.vlgmr.msra.gmra.mxu0 %vm163_vm2, %v1676_v21  ;;  %v1688_v24 = vmax.f32 %v147_v22, 0.0 }
  0xd0   :  { %1452 = vmatpush3.msra.mxu1 %v26_v25  ;;  %1466 = vmatpush3.msra.mxu0 %v1710_v29 }
  0xd1   :  { %355 = vrot.lane.b32.xlu1 %v1676_v21, %s1600_s13  ;;  %1438 = vmatprep.mubr.msk.f32.mxu1 %vm163_vm2, %v1688_v24 }
  0xd2   :  { %1448 = vmatprep.mubr.msk.f32.mxu0 %vm163_vm2, %v1688_v24  ;;  %1453 = vmatprep.subr.mxu1 %v25_v26 }
  0xd3   :  { %1439 = vmatmul.mubr.msk.f32.gmra.mxu1 %vm163_vm2, %v1686_v23  ;;  %1449 = vmatmul.mubr.msk.f32.gmra.mxu0 %vm163_vm2, %v1686_v23 }
  0xd4   :  { %1459 = vmatprep.mubr.msk.f32.mxu1 %vm391_vm3, %v364_v27  ;;  %1454 = vmatpush3.msra.mxu1 %v25_v26 }
  0xd5   :  { %1467 = vmatprep.subr.mxu0 %v1602_v28  ;;  %1455 = vmatprep.subr.mxu1 %v24_v30 }
  0xd6   :  { %1468 = vmatpush3.msra.mxu0 %v1719_v31  ;;  %1456 = vmatpush3.msra.mxu1 %v24_v30 }
  0xd7   :  { %1469 = vmatprep.subr.mxu0 %v1602_v28  ;;  %1457 = vmatprep.subr.mxu1 %v23_v32 }
  0xd8   :  { %1458 = vmatpush3.msra.mxu1 %v23_v32  ;;  %1470 = vmatpush3.msra.mxu0 %v1732_v33 }
  0xd9   :  { %1476 = vmatprep.subr.mxu1 %v1602_v28  ;;  %1471 = vmatprep.subr.mxu0 %v1602_v28 }
  0xda   :  { %1473 = vmatprep.mubr.msk.f32.mxu0 %vm1603_vm4, %v1602_v28  ;;  %1472 = vmatpush3.msra.mxu0 %v1738_v34 }
  0xdb   :  { %1474 = vmatmul.mubr.msk.f32.vlgmr.msra.gmra.mxu0 %vm391_vm3, %v1643_v3  ;;  %1487 = vmatprep.subr.mxu0 %v1602_v28 }
  0xdc   :  { %1488 = vmatpush3.msra.mxu0 %v1710_v29  ;;  %1495 = vmatprep.mubr.msk.f32.mxu0 %vm1603_vm4, %v1602_v28 }
  0xdd   :  { %1489 = vmatprep.subr.mxu0 %v1602_v28 }
  0xde   :  { %1490 = vmatpush3.msra.mxu0 %v1719_v31 }
  0xdf   :  { %1491 = vmatprep.subr.mxu0 %v1602_v28 }
  0xe0   :  { %1492 = vmatpush3.msra.mxu0 %v1732_v33 }
  0xe1   :  { %1493 = vmatprep.subr.mxu0 %v1602_v28 }
  0xe2   :  { %1494 = vmatpush3.msra.mxu0 %v1738_v34 }
  0xe3   :  { %1509 = vmatprep.subr.mxu0 %v1602_v28 }
  0xe9   :  { %v366_v35 = vpop.permute.xlu1 %365 }
 0x13f   :  { %v354_v36 = vpop.permute.xlu1 %353  ;;  %v358_v37 = vpop.permute.xlu0 %357 }
 0x140   :  { %367 = vrot.lane.b32.xlu1 %v354_v36, %s1599_s28  ;;  %375 = vrot.lane.b32.xlu0 %v358_v37, %s1599_s28 }
 0x143   :  { %v356_v38 = vpop.permute.xlu1 %355 }
 0x144   :  { %369 = vrot.lane.b32.xlu1 %v356_v38, %s1599_s28  ;;  %359 = vrot.lane.b32.xlu0 %v1676_v21, %s1601_s14 }
 0x148   :  { %361 = vrot.lane.b32.xlu0 %v1688_v24, %s1601_s14 }
 0x18f   :  { %v1437_v41 = vpop.f32.mrf.mxu1  ;;  %v1447_v42 = vpop.f32.mrf.mxu0 }
 0x190   :  { %v1775_v43 = vadd.f32 %v1437_v41, %v1767_v39  ;;  %v1778_v44 = vadd.f32 %v1447_v42, %v1772_v40 }
 0x191   :  { %v242_v45 = vpop.f32.mrf.mxu1  ;;  %v1780_v46 = vpop.f32.mrf.mxu0 }
 0x192   :  { %v243_v15 = vadd.f32 %v1767_v39, %v242_v45  ;;  %v332_v26 = vadd.f32 %v1772_v40, %v1780_v46 }
 0x193   :  { %v1440_v47 = vpop.f32.mrf.mxu1  ;;  %v1450_v48 = vpop.f32.mrf.mxu0 }
 0x194   :  { %v1783_v49 = vadd.f32 %v1440_v47, %v1767_v39  ;;  %v1786_v50 = vadd.f32 %v1450_v48, %v1772_v40 }
 0x195   :  { %v1792_v55 = vpop.f32.mrf.mxu0  ;;  %v1828_v4 = vpop.f32.mrf.mxu1 }
 0x19b   :  { %v557_v57 = vpop.f32.mrf.mxu0 }
 0x19d   :  { %v1475_v59 = vpop.f32.mrf.mxu0 }
 0x1b2   :  { %v376_v51 = vpop.permute.xlu0 %375  ;;  %v368_v62 = vpop.permute.xlu1 %367 }
 0x1b3   :  { %v384_v52 = vsel %vm163_vm2, %v366_v35, %v376_v51 }
 0x1b4   :  { %1460 = vmatmul.mubr.msk.f32.vlgmr.msra.gmra.mxu1 %vm391_vm3, %v384_v52 }
 0x1b5   :  { %1477 = vmatpush3.msra.mxu1 %v1797_v56 }
 0x1b6   :  { %v360_v53 = vpop.permute.xlu0 %359  ;;  %1478 = vmatprep.subr.mxu1 %v1602_v28  ;;  %v370_v1 = vpop.permute.xlu1 %369 }
 0x1b7   :  { %377 = vrot.lane.b32.xlu0 %v360_v53, %s1599_s28  ;;  %1479 = vmatpush3.msra.mxu1 %v1804_v58 }
 0x1b8   :  { %1480 = vmatprep.subr.mxu1 %v1602_v28 }
 0x1b9   :  { %1481 = vmatpush3.msra.mxu1 %v1811_v60 }
 0x1ba   :  { %v362_v54 = vpop.permute.xlu0 %361  ;;  %1482 = vmatprep.subr.mxu1 %v1602_v28 }
 0x1bb   :  { %379 = vrot.lane.b32.xlu0 %v362_v54, %s1599_s28  ;;  %1483 = vmatpush3.msra.mxu1 %v1817_v61 }
 0x1bc   :  { %1498 = vmatprep.subr.mxu1 %v1602_v28 }
 0x229   :  { %v378_v63 = vpop.permute.xlu0 %377 }
 0x22a   :  { %v385_v0 = vsel %vm163_vm2, %v368_v62, %v378_v63 }
 0x22b   :  { %1462 = vmatprep.mubr.msk.f32.mxu1 %vm391_vm3, %v385_v0 }
 0x22d   :  { %v380_v2 = vpop.permute.xlu0 %379 }
 0x22e   :  { %v386_v3 = vsel %vm163_vm2, %v370_v1, %v380_v2 }
 0x22f   :  { %1463 = vmatmul.mubr.msk.f32.gmra.mxu1 %vm391_vm3, %v386_v3 }
 0x230   :  { %1484 = vmatprep.mubr.msk.f32.mxu1 %vm1603_vm4, %v1602_v28 }
 0x274   :  { %v1461_v5 = vpop.f32.mrf.mxu1 }
 0x275   :  { %v476_v46 = vadd.f32 %v1461_v5, %v1833_v6 }
 0x276   :  { %v470_v7 = vpop.f32.mrf.mxu1 }
 0x277   :  { %v471_v8 = vadd.f32 %v1833_v6, %v470_v7 }
 0x279   :  { %v561_v9 = vadd.f32 %v557_v57, %v471_v8 }
 0x27b   :  { %v562_v10 = vmax.f32 %v561_v9, 0.0 }
 0x27d   :  { %1485 = vmatmul.mubr.msk.f32.vlgmr.msra.gmra.mxu1 %vm391_vm3, %v562_v10 }
 0x27e   :  { %1499 = vmatpush3.msra.mxu1 %v1797_v56  ;;  %1506 = vmatprep.mubr.msk.f32.mxu1 %vm1603_vm4, %v1602_v28 }
 0x27f   :  { %1500 = vmatprep.subr.mxu1 %v1602_v28 }
 0x280   :  { %1501 = vmatpush3.msra.mxu1 %v1804_v58 }
 0x281   :  { %1502 = vmatprep.subr.mxu1 %v1602_v28 }
 0x282   :  { %1503 = vmatpush3.msra.mxu1 %v1811_v60 }
 0x283   :  { %1504 = vmatprep.subr.mxu1 %v1602_v28 }
 0x284   :  { %1505 = vmatpush3.msra.mxu1 %v1817_v61 }
 0x285   :  { %1520 = vmatprep.subr.mxu1 %v1602_v28 }
 0x2ef   :  { %v1847_v11 = vpop.f32.mrf.mxu1 }
 0x2f1   :  { %v1849_v12 = vpop.f32.mrf.mxu1 }
 0x33d   :  { %v636_v14 = vpop.f32.mrf.mxu1 }
 0x33e   :  { %v637_v16 = vadd.f32 %v1854_v13, %v636_v14 }
 0x33f   :  { %v1486_v17 = vpop.f32.mrf.mxu1 }
 0x340   :  { %v640_v18 = vadd.f32 %v637_v16, %v243_v15  ;;  %648 = vrot.lane.b32.xlu1 %v637_v16, %s1604_s22 }
 0x342   :  { %v1332_v19 = vmul.f32 -1.442695, %v640_v18 }
 0x344   :  { %660 = vrot.lane.b32.xlu1 %v562_v10, %s1600_s13  ;;  %1574 = vpow2.f32 %v1332_v19 }
 0x351   :  { %v1575_v20 = vpop.eup %1574 }
 0x352   :  { %v644_v21 = vadd.f32 1.0, %v1575_v20 }
 0x354   :  { %1576 = vrcp.f32 %v644_v21 }
 0x361   :  { %v1577_v22 = vpop.eup %1576 }
 0x362   :  { %v654_v36 = vsub.f32 1.0, %v1577_v22 }
 0x3b2   :  { %v649_v25 = vpop.permute.xlu1 %648 }
 0x3b3   :  { %v651_v27 = vmul.f32 %v1577_v22, %v649_v25 }
 0x3b5   :  { %v652_v30 = vadd.f32 %v651_v27, %v332_v26 }
 0x3b6   :  { %v661_v35 = vpop.permute.xlu1 %660 }
 0x3b7   :  { %1578 = vtanh.f32 %v652_v30  ;;  %v663_v38 = vmul.f32 %v1577_v22, %v661_v35 }
 0x3c4   :  { %v1579_v32 = vpop.eup %1578 }
 0x3c5   :  { %656 = vrot.lane.b32.xlu0 %v1579_v32, %s1600_s13 }
 0x437   :  { %v657_v37 = vpop.permute.xlu0 %656 }
 0x438   :  { %v659_v41 = vmul.f32 %v657_v37, %v654_v36  ;;  %v40_v37 = vld [vmem:[%s1983_s1 + $0xc0] sm:$0xff] }
 0x43a   :  { %v664_v42 = vadd.f32 %v663_v38, %v659_v41  ;;  %v39_v38 = vld [vmem:[%s1983_s1 + $0xb8] sm:$0xff]  ;;  %v486_v41 = vadd.f32 %v1847_v11, %v1833_v6 }
 0x43c   :  { %666 = vrot.lane.b32.xlu0 %v664_v42, %s1599_s28 }
 0x4ae   :  { %v1864_v45 = vpop.permute.xlu0 %666 }
 0x4af   :  { %1496 = vmatmul.mubr.msk.f32.vlgmr.msra.gmra.mxu0 %vm391_vm3, %v1864_v45 }
 0x4b0   :  { %1510 = vmatpush3.msra.mxu0 %v1710_v29  ;;  %1517 = vmatprep.mubr.msk.f32.mxu0 %vm1603_vm4, %v1602_v28 }
 0x4b1   :  { %1511 = vmatprep.subr.mxu0 %v1602_v28 }
 0x4b2   :  { %1512 = vmatpush3.msra.mxu0 %v1719_v31 }
 0x4b3   :  { %1513 = vmatprep.subr.mxu0 %v1602_v28 }
 0x4b4   :  { %1514 = vmatpush3.msra.mxu0 %v1732_v33 }
 0x4b5   :  { %1515 = vmatprep.subr.mxu0 %v1602_v28 }
 0x4b6   :  { %1516 = vmatpush3.msra.mxu0 %v1738_v34 }
 0x4b7   :  { %1531 = vmatprep.subr.mxu0 %v1602_v28 }
 0x56f   :  { %v736_v47 = vpop.f32.mrf.mxu0 }
 0x570   :  { %v740_v48 = vadd.f32 %v736_v47, %v476_v46 }
 0x571   :  { %v1497_v51 = vpop.f32.mrf.mxu0 }
 0x572   :  { %v741_v52 = vmax.f32 %v740_v48, 0.0  ;;  %v1342_v48 = vld [vmem:[%s1983_s1 + $0xd8] ss:$0 sm:$0xff] }
 0x574   :  { %1507 = vmatmul.mubr.msk.f32.vlgmr.msra.gmra.mxu1 %vm391_vm3, %v741_v52 }
 0x575   :  { %1521 = vmatpush3.msra.mxu1 %v1797_v56  ;;  %1528 = vmatprep.mubr.msk.f32.mxu1 %vm1603_vm4, %v1602_v28 }
 0x576   :  { %1522 = vmatprep.subr.mxu1 %v1602_v28 }
 0x577   :  { %1523 = vmatpush3.msra.mxu1 %v1804_v58 }
 0x578   :  { %1524 = vmatprep.subr.mxu1 %v1602_v28 }
 0x579   :  { %1525 = vmatpush3.msra.mxu1 %v1811_v60 }
 0x57a   :  { %1526 = vmatprep.subr.mxu1 %v1602_v28 }
 0x57b   :  { %1527 = vmatpush3.msra.mxu1 %v1817_v61 }
 0x57c   :  { %1542 = vmatprep.subr.mxu1 %v1602_v28 }
 0x634   :  { %v811_v53 = vpop.f32.mrf.mxu1 }
 0x635   :  { %v812_v54 = vadd.f32 %v1854_v13, %v811_v53 }
 0x636   :  { %v1508_v57 = vpop.f32.mrf.mxu1 }
 0x637   :  { %v815_v59 = vadd.f32 %v812_v54, %v1775_v43  ;;  %823 = vrot.lane.b32.xlu1 %v812_v54, %s1604_s22 }
 0x639   :  { %v1335_v62 = vmul.f32 -1.442695, %v815_v59 }
 0x63b   :  { %835 = vrot.lane.b32.xlu1 %v741_v52, %s1600_s13  ;;  %1580 = vpow2.f32 %v1335_v62 }
 0x648   :  { %v1581_v63 = vpop.eup %1580 }
 0x649   :  { %v819_v0 = vadd.f32 1.0, %v1581_v63 }
 0x64b   :  { %1582 = vrcp.f32 %v819_v0 }
 0x658   :  { %v1583_v1 = vpop.eup %1582 }
 0x659   :  { %v829_v43 = vsub.f32 1.0, %v1583_v1 }
 0x6a9   :  { %v824_v2 = vpop.permute.xlu1 %823 }
 0x6aa   :  { %v826_v3 = vmul.f32 %v1583_v1, %v824_v2 }
 0x6ac   :  { %v827_v5 = vadd.f32 %v826_v3, %v1778_v44  ;;  %v481_v44 = vadd.f32 %v1833_v6, %v1849_v12 }
 0x6ad   :  { %v836_v8 = vpop.permute.xlu1 %835 }
 0x6ae   :  { %1584 = vtanh.f32 %v827_v5  ;;  %v838_v10 = vmul.f32 %v1583_v1, %v836_v8 }
 0x6bb   :  { %v1585_v7 = vpop.eup %1584 }
 0x6bc   :  { %831 = vrot.lane.b32.xlu0 %v1585_v7, %s1600_s13 }
 0x72e   :  { %v832_v9 = vpop.permute.xlu0 %831 }
 0x72f   :  { %v834_v14 = vmul.f32 %v832_v9, %v829_v43 }
 0x731   :  { %v839_v15 = vadd.f32 %v838_v10, %v834_v14 }
 0x733   :  { %841 = vrot.lane.b32.xlu0 %v839_v15, %s1599_s28 }
 0x7a5   :  { %v1897_v16 = vpop.permute.xlu0 %841 }
 0x7a6   :  { %1518 = vmatmul.mubr.msk.f32.vlgmr.msra.gmra.mxu0 %vm391_vm3, %v1897_v16 }
 0x7a7   :  { %1532 = vmatpush3.msra.mxu0 %v1710_v29  ;;  %1539 = vmatprep.mubr.msk.f32.mxu0 %vm1603_vm4, %v1602_v28 }
 0x7a8   :  { %1533 = vmatprep.subr.mxu0 %v1602_v28 }
 0x7a9   :  { %1534 = vmatpush3.msra.mxu0 %v1719_v31 }
 0x7aa   :  { %1535 = vmatprep.subr.mxu0 %v1602_v28 }
 0x7ab   :  { %1536 = vmatpush3.msra.mxu0 %v1732_v33  ;;  %v253_v33 = vadd.f32 %v1767_v39, %v1828_v4  ;;  %v42_v4 = vld [vmem:[%s1983_s1 + $0xd0] sm:$0xff] }
 0x7ac   :  { %1537 = vmatprep.subr.mxu0 %v1602_v28 }
 0x7ad   :  { %1538 = vmatpush3.msra.mxu0 %v1738_v34 }
 0x7ae   :  { %1553 = vmatprep.subr.mxu0 %v42_v4 }
 0x866   :  { %v911_v17 = vpop.f32.mrf.mxu0 }
 0x867   :  { %v915_v29 = vadd.f32 %v911_v17, %v481_v44 }
 0x868   :  { %v1519_v18 = vpop.f32.mrf.mxu0 }
 0x869   :  { %v916_v19 = vmax.f32 %v915_v29, 0.0 }
 0x86b   :  { %1529 = vmatmul.mubr.msk.f32.vlgmr.msra.gmra.mxu1 %vm391_vm3, %v916_v19 }
 0x86c   :  { %1543 = vmatpush3.msra.mxu1 %v1797_v56  ;;  %1550 = vmatprep.mubr.msk.f32.mxu1 %vm1603_vm4, %v1602_v28 }
 0x86d   :  { %1544 = vmatprep.subr.mxu1 %v1602_v28 }
 0x86e   :  { %1545 = vmatpush3.msra.mxu1 %v1804_v58 }
 0x86f   :  { %1546 = vmatprep.subr.mxu1 %v1602_v28 }
 0x870   :  { %1547 = vmatpush3.msra.mxu1 %v1811_v60 }
 0x871   :  { %1548 = vmatprep.subr.mxu1 %v1602_v28 }
 0x872   :  { %1549 = vmatpush3.msra.mxu1 %v1817_v61  ;;  %v342_v61 = vadd.f32 %v1772_v40, %v1792_v55  ;;  %v41_v55 = vld [vmem:[%s1983_s1 + $0xc8] sm:$0xff] }
 0x92b   :  { %v986_v31 = vpop.f32.mrf.mxu1 }
 0x92c   :  { %v987_v34 = vadd.f32 %v1854_v13, %v986_v31 }
 0x92d   :  { %v1530_v56 = vpop.f32.mrf.mxu1 }
 0x92e   :  { %v990_v12 = vadd.f32 %v987_v34, %v253_v33  ;;  %998 = vrot.lane.b32.xlu1 %v987_v34, %s1604_s22 }
 0x930   :  { %v1338_v58 = vmul.f32 -1.442695, %v990_v12 }
 0x932   :  { %1010 = vrot.lane.b32.xlu1 %v916_v19, %s1600_s13  ;;  %1586 = vpow2.f32 %v1338_v58 }
 0x93f   :  { %v1587_v20 = vpop.eup %1586 }
 0x940   :  { %v994_v60 = vadd.f32 1.0, %v1587_v20 }
 0x942   :  { %1588 = vrcp.f32 %v994_v60 }
 0x94f   :  { %v1589_v28 = vpop.eup %1588 }
 0x950   :  { %v1004_v27 = vsub.f32 1.0, %v1589_v28 }
 0x9a0   :  { %v999_v21 = vpop.permute.xlu1 %998 }
 0x9a1   :  { %v1001_v22 = vmul.f32 %v1589_v28, %v999_v21 }
 0x9a3   :  { %v1002_v39 = vadd.f32 %v1001_v22, %v342_v61 }
 0x9a4   :  { %v1011_v26 = vpop.permute.xlu1 %1010 }
 0x9a5   :  { %1590 = vtanh.f32 %v1002_v39  ;;  %v1013_v32 = vmul.f32 %v1589_v28, %v1011_v26 }
 0x9b2   :  { %v1591_v25 = vpop.eup %1590 }
 0x9b3   :  { %1006 = vrot.lane.b32.xlu0 %v1591_v25, %s1600_s13 }
 0xa25   :  { %v1007_v30 = vpop.permute.xlu0 %1006 }
 0xa26   :  { %v1009_v35 = vmul.f32 %v1007_v30, %v1004_v27 }
 0xa28   :  { %v1014_v36 = vadd.f32 %v1013_v32, %v1009_v35 }
 0xa2a   :  { %1016 = vrot.lane.b32.xlu0 %v1014_v36, %s1599_s28 }
 0xa9c   :  { %v1017_v40 = vpop.permute.xlu0 %1016 }
 0xa9d   :  { %1540 = vmatmul.mubr.msk.f32.vlgmr.msra.gmra.mxu0 %vm391_vm3, %v1017_v40 }
 0xa9e   :  { %1554 = vmatpush3.msra.mxu0 %v42_v4  ;;  %1561 = vmatprep.mubr.msk.f32.mxu0 %vm391_vm3, %v1864_v45 }
 0xa9f   :  { %1555 = vmatprep.subr.mxu0 %v41_v55 }
 0xaa0   :  { %1556 = vmatpush3.msra.mxu0 %v41_v55 }
 0xaa1   :  { %1557 = vmatprep.subr.mxu0 %v40_v37 }
 0xaa2   :  { %1558 = vmatpush3.msra.mxu0 %v40_v37 }
 0xaa3   :  { %1559 = vmatprep.subr.mxu0 %v39_v38 }
 0xaa4   :  { %1560 = vmatpush3.msra.mxu0 %v39_v38 }
 0xaa5   :  { %1562 = vmatmul.mubr.msk.f32.vlgmr.msra.gmra.mxu0 %vm391_vm3, %v1897_v16 }
 0xaa6   :  { %1564 = vmatprep.mubr.msk.f32.mxu0 %vm391_vm3, %v1017_v40 }
 0xb5d   :  { %v1086_v42 = vpop.f32.mrf.mxu0 }
 0xb5e   :  { %v1090_v45 = vadd.f32 %v1086_v42, %v486_v41 }
 0xb5f   :  { %v1541_v46 = vpop.f32.mrf.mxu0 }
 0xb60   :  { %v1091_v47 = vmax.f32 %v1090_v45, 0.0 }
 0xb62   :  { %1551 = vmatmul.mubr.msk.f32.vlgmr.msra.gmra.mxu1 %vm391_vm3, %v1091_v47 }
 0xb65   :  { %v1563_v51 = vpop.f32.mrf.mxu0 }
 0xb66   :  { %v1271_v52 = vadd.f32 %v1563_v51, %v1342_v48 }
 0xb67   :  { %v1265_v53 = vpop.f32.mrf.mxu0 }
 0xb68   :  { %1285 = vst [vmem:[%s1986_s3 + $0x8] sm:$0xff] %v1271_v52  ;;  %v1266_v54 = vadd.f32 %v1342_v48, %v1265_v53 }
 0xb6a   :  { %1284 = vst [vmem:[%s1986_s3] sm:$0xff] %v1266_v54 }
 0xc22   :  { %v1161_v6 = vpop.f32.mrf.mxu1 }
 0xc23   :  { %v1162_v11 = vadd.f32 %v1854_v13, %v1161_v6 }
 0xc24   :  { %v1552_v57 = vpop.f32.mrf.mxu1 }
 0xc25   :  { %v1165_v59 = vadd.f32 %v1162_v11, %v1783_v49  ;;  %1173 = vrot.lane.b32.xlu1 %v1162_v11, %s1604_s22 }
 0xc27   :  { %v1341_v62 = vmul.f32 -1.442695, %v1165_v59 }
 0xc29   :  { %1185 = vrot.lane.b32.xlu1 %v1091_v47, %s1600_s13  ;;  %1592 = vpow2.f32 %v1341_v62 }
 0xc2d   :  { %1289 = vrot.lane.b32.xlu1 %v1688_v24, %s1600_s13 }
 0xc36   :  { %v1593_v63 = vpop.eup %1592 }
 0xc37   :  { %v1169_v0 = vadd.f32 1.0, %v1593_v63 }
 0xc39   :  { %1594 = vrcp.f32 %v1169_v0 }
 0xc46   :  { %v1595_v1 = vpop.eup %1594 }
 0xc47   :  { %v1179_v7 = vsub.f32 1.0, %v1595_v1 }
 0xc97   :  { %v1174_v2 = vpop.permute.xlu1 %1173 }
 0xc98   :  { %v1176_v3 = vmul.f32 %v1595_v1, %v1174_v2 }
 0xc9a   :  { %v1177_v13 = vadd.f32 %v1176_v3, %v1786_v50 }
 0xc9b   :  { %v1186_v49 = vpop.permute.xlu1 %1185 }
 0xc9c   :  { %1596 = vtanh.f32 %v1177_v13  ;;  %v1188_v43 = vmul.f32 %v1595_v1, %v1186_v49 }
 0xc9f   :  { %v1290_v50 = vpop.permute.xlu1 %1289 }
 0xca9   :  { %v1597_v5 = vpop.eup %1596 }
 0xcaa   :  { %1181 = vrot.lane.b32.xlu0 %v1597_v5, %s1600_s13 }
 0xd1c   :  { %v1182_v8 = vpop.permute.xlu0 %1181 }
 0xd1d   :  { %v1184_v9 = vmul.f32 %v1182_v8, %v1179_v7 }
 0xd1f   :  { %v1189_v24 = vadd.f32 %v1188_v43, %v1184_v9 }
 0xd21   :  { %1195 = vrot.lane.b32.xlu0 %v1189_v24, %s1599_s28 }
 0xd25   :  { %1292 = vrot.lane.b32.xlu0 %v1686_v23, %s1601_s14 }
 0xd93   :  { %v1196_v10 = vpop.permute.xlu0 %1195 }
 0xd94   :  { %1565 = vmatmul.mubr.msk.f32.gmra.mxu0 %vm391_vm3, %v1196_v10  ;;  %v1295_v14 = vsel %vm391_vm3, %v1196_v10, %v1290_v50 }
 0xd97   :  { %v1293_v15 = vpop.permute.xlu0 %1292 }
 0xd98   :  { %v1297_v16 = vsel %vm1296_vm5, %v1295_v14, %v1293_v15 }
 0xd99   :  { %1299 = vst.msk [vmem:[%s1987_s4] sm:$0xff] %vm1298_vm6, %v1297_v16 }
 0xe54   :  { %v1566_v44 = vpop.f32.mrf.mxu0 }
 0xe55   :  { %v1281_v17 = vadd.f32 %v1566_v44, %v1342_v48 }
 0xe56   :  { %v1275_v29 = vpop.f32.mrf.mxu0 }
 0xe57   :  { %1287 = vst [vmem:[%s1986_s3 + $0x18] sm:$0xff] %v1281_v17  ;;  %v1276_v23 = vadd.f32 %v1342_v48, %v1275_v29 }
 0xe59   :  { %1286 = vst [vmem:[%s1986_s3 + $0x10] sm:$0xff] %v1276_v23 }

</bundles_post_ra>
